<compile_context>
chip_gen: v7x
topology: tpu7x:2x2x1
jax: 0.10.0
libtpu: 0.0.40
codegen_flags: <defaults>
</compile_context>

<pallas_src>
import jax
import jax.numpy as jnp
from jax.experimental import pallas as pl
from jax.experimental.pallas import tpu as pltpu

LANE = 128      # pad feature dims to a multiple of this (lane-dense loads/stores)
SUBLANE = 8     # pad batch to a multiple of this


def _round_up(x, m):
    return ((x + m - 1) // m) * m


# -----------------------------------------------------------------------------
# Pallas kernel: one grid step per layer.  The activation carry lives in a
# persistent VMEM scratch; layer l+1's weight block streams while layer l runs.
# -----------------------------------------------------------------------------
def _pnn_layer_kernel(x_ref, w_ref, b_ref, o_ref, h_ref):
    l = pl.program_id(0)

    @pl.when(l == 0)
    def _():
        h_ref[...] = x_ref[...]                       # zero-padded input, f32

    h = h_ref[...]                                    # (B_pad, D_pad) f32
    w = w_ref[0]                                      # (D_pad, D_pad) bf16
    b = b_ref[0]                                      # (1, D_pad)     f32

    acc = jnp.dot(h.astype(jnp.bfloat16), w,
                  preferred_element_type=jnp.float32)  # MXU bf16, f32 accumulate
    h_new = jnp.maximum(acc + b, 0.0)                  # VPU, f32
    h_ref[...] = h_new

    @pl.when(l == pl.num_programs(0) - 1)
    def _():
        o_ref[...] = h_new.astype(o_ref.dtype)


def pnn_forward_pallas(packed, x, task_id=-1):
    """Run the fused PNN forward. `packed` comes from pack_pnn_params (built once)."""
    w_slab = packed["w_slab"]        # (L, D_pad, D_pad) bf16
    b_slab = packed["b_slab"]        # (L, 1, D_pad)     f32
    C = packed["n_columns"]
    n_in0 = packed["n_in0"]
    n_out_last = packed["n_out_last"]
    L, D_pad, _ = w_slab.shape

    B = x.shape[0]
    B_pad = _round_up(max(B, 1), SUBLANE)
    x_pad = jnp.pad(x.astype(jnp.float32),
                    ((0, B_pad - B), (0, D_pad - n_in0)))

    flops = 2 * B_pad * D_pad * D_pad * L
    bytes_accessed = (x_pad.size * 4 + w_slab.size * 2 + b_slab.size * 4
                      + B_pad * D_pad * 4)

    out_pad = pl.pallas_call(
        _pnn_layer_kernel,
        out_shape=jax.ShapeDtypeStruct((B_pad, D_pad), jnp.float32),
        grid_spec=pltpu.PrefetchScalarGridSpec(
            num_scalar_prefetch=0,
            grid=(L,),
            in_specs=[
                # input: resident across the whole (sequential) layer loop
                pl.BlockSpec((B_pad, D_pad), lambda l: (0, 0)),
                # per-layer weight block: streamed + double-buffered by Pallas
                pl.BlockSpec((1, D_pad, D_pad), lambda l: (l, 0, 0)),
                pl.BlockSpec((1, 1, D_pad), lambda l: (l, 0, 0)),
            ],
            out_specs=pl.BlockSpec((B_pad, D_pad), lambda l: (0, 0)),
            scratch_shapes=[pltpu.VMEM((B_pad, D_pad), jnp.float32)],
        ),
        compiler_params=pltpu.CompilerParams(
            dimension_semantics=("arbitrary",),       # layers are sequential
            vmem_limit_bytes=32 * 1024 * 1024,        # under v7x scoped budget
        ),
        cost_estimate=pl.CostEstimate(flops=flops, transcendentals=0,
                                      bytes_accessed=bytes_accessed),
    )(x_pad, w_slab, b_slab)

    col = task_id % C
    return out_pad[:B, col * n_out_last:(col + 1) * n_out_last]


# -----------------------------------------------------------------------------
# Parameter construction (mirrors PNN.new_task / PNNLinearBlock.__init__)
# -----------------------------------------------------------------------------
def _init_linear(key, n_in, n_out):
    """Deterministic init matching nn.Linear's uniform(-1/sqrt(n_in), 1/sqrt(n_in))."""
    kw, kb = jax.random.split(key)
    bound = 1.0 / jnp.sqrt(jnp.float32(n_in))
    w = jax.random.uniform(kw, (n_out, n_in), jnp.float32, -bound, bound)
    b = jax.random.uniform(kb, (n_out,), jnp.float32, -bound, bound)
    return w, b


def build_pnn_params(key, n_layers, sizes, n_columns):
    """columns[col][layer] = dict(w, b, u_ws, u_bs). u_* has `col` entries when layer>0."""
    assert len(sizes) == n_layers + 1
    columns = []
    for col in range(n_columns):
        layers = []
        for depth in range(n_layers):
            n_in, n_out = sizes[depth], sizes[depth + 1]
            key, kw = jax.random.split(key)
            w, b = _init_linear(kw, n_in, n_out)
            u_ws, u_bs = [], []
            if depth > 0:
                for _ in range(col):
                    key, ku = jax.random.split(key)
                    uw, ub = _init_linear(ku, n_in, n_out)
                    u_ws.append(uw)
                    u_bs.append(ub)
            layers.append(dict(w=w, b=b, u_ws=u_ws, u_bs=u_bs))
        columns.append(layers)
    return columns


def pack_pnn_params(columns, sizes):
    """Build-time packing (hoisted out of the forward path).

    Produces one bf16 weight slab (L, D_pad, D_pad) and one f32 bias slab
    (L, 1, D_pad), D_pad = max padded width over all layers:
      layer 0    : column-i block = W_i^0.T applied to the shared raw input.
      layer l>0  : row-block j / col-block i = U_{i,j}.T (j<i), W_i.T (j==i), 0 (j>i);
                   bias block i = b_{W_i} + sum_{j<i} b_{U_{i,j}}.
    Padding rows/cols/biases are zero, so padded lanes stay exactly zero
    through every ReLU and contribute nothing downstream.
    """
    C = len(columns)
    n_layers = len(columns[0])

    d_ins = [sizes[0]] + [C * sizes[l] for l in range(1, n_layers)]
    d_outs = [C * sizes[l + 1] for l in range(n_layers)]
    D_pad = _round_up(max(d_ins + d_outs), LANE)

    w_slab = jnp.zeros((n_layers, D_pad, D_pad), jnp.float32)
    b_slab = jnp.zeros((n_layers, 1, D_pad), jnp.float32)

    for l in range(n_layers):
        n_in, n_out = sizes[l], sizes[l + 1]
        for i in range(C):
            blk = columns[i][l]
            co = i * n_out
            if l == 0:
                w_slab = w_slab.at[l, :n_in, co:co + n_out].set(blk["w"].T)
                b_slab = b_slab.at[l, 0, co:co + n_out].set(blk["b"])
            else:
                b_sum = blk["b"]
                for j, (uw, ub) in enumerate(zip(blk["u_ws"], blk["u_bs"])):
                    w_slab = w_slab.at[l, j * n_in:(j + 1) * n_in,
                                       co:co + n_out].set(uw.T)
                    b_sum = b_sum + ub
                w_slab = w_slab.at[l, i * n_in:(i + 1) * n_in,
                                   co:co + n_out].set(blk["w"].T)
                b_slab = b_slab.at[l, 0, co:co + n_out].set(b_sum)

    return dict(w_slab=w_slab.astype(jnp.bfloat16),   # halve weight HBM traffic
                b_slab=b_slab,                        # bias stays f32 (VPU add)
                n_columns=C, n_in0=sizes[0], n_out_last=sizes[-1])


# -----------------------------------------------------------------------------
# Pure-JAX reference mirroring the PyTorch module exactly (for verification)
# -----------------------------------------------------------------------------
def pnn_forward_ref(columns, x, n_layers, task_id=-1):
    def block(blk, xs):
        cur = xs[-1] @ blk["w"].T + blk["b"]
        prev = [xj @ uw.T + ub
                for uw, ub, xj in zip(blk["u_ws"], blk["u_bs"], xs)]
        return jnp.maximum(cur + sum(prev), 0.0)

    inputs = [block(col[0], [x]) for col in columns]
    for l in range(1, n_layers):
        outputs = []
        for i, column in enumerate(columns):
            outputs.append(block(column[l], inputs[:i + 1]))
        inputs = outputs
    return inputs[task_id]


# TODO(synk): new_task/freeze_columns/parameters/cuda are training-time graph
# plumbing with no forward-pass compute; they stay as Python-level param management.

# -----------------------------------------------------------------------------
if __name__ == "__main__":
    n_layers = 3
    sizes = [16, 32, 32, 16]   # input size + one out-size per layer
    n_columns = 3              # three `new_task` calls -> lateral connections used
    batch = 4

    key = jax.random.PRNGKey(0)
    kp, kx = jax.random.split(key)
    columns = build_pnn_params(kp, n_layers, sizes, n_columns)
    packed = pack_pnn_params(columns, sizes)     # one-time pre-layout (not per forward)
    x = jax.random.normal(kx, (batch, sizes[0]), jnp.float32)

    out = pnn_forward_pallas(packed, x, task_id=-1)
    out = jax.block_until_ready(out)

    ref = pnn_forward_ref(columns, x, n_layers, task_id=-1)
    assert out.shape == (batch, sizes[-1])
    # bf16 weights in the kernel vs f32 reference -> bf16-level tolerance.
    assert jnp.allclose(out, ref, atol=3e-2, rtol=3e-2), "mismatch vs JAX reference"

    print("KERNEL_OK")
</pallas_src>

<mosaic_0001>
module attributes {stable_mosaic.version = 11 : i64} {
  func.func @_pnn_layer_kernel(%arg0: i32, %arg1: memref<8x128xf32, #tpu.memory_space<vmem>>, %arg2: memref<1x128x128xbf16, #tpu.memory_space<vmem>>, %arg3: memref<1x1x128xf32, #tpu.memory_space<vmem>>, %arg4: memref<8x128xf32, #tpu.memory_space<vmem>>, %arg5: memref<8x128xf32, #tpu.memory_space<vmem>>) attributes {dimension_semantics = [#tpu.dimension_semantics<arbitrary>], iteration_bounds = array<i64: 3>, scalar_prefetch = 0 : i64, scratch_operands = 1 : i64, tpu.core_type = #tpu.core_type<tc>, window_params = [{pipeline_mode = #tpu.pipeline_mode<synchronous>, transform_indices = @transform_0, window_bounds = array<i64: 8, 128>}, {transform_indices = @transform_1, window_bounds = array<i64: 1, 128, 128>}, {transform_indices = @transform_2, window_bounds = array<i64: 1, 1, 128>}, {pipeline_mode = #tpu.pipeline_mode<synchronous>, transform_indices = @transform_3, window_bounds = array<i64: 8, 128>}]} {
    %c0_i32 = arith.constant 0 : i32
    %0 = arith.cmpi eq, %arg0, %c0_i32 : i32
    %1 = arith.extui %0 : i1 to i32
    %c0_i32_0 = arith.constant 0 : i32
    %2 = arith.cmpi ne, %1, %c0_i32_0 : i32
    scf.if %2 {
      %c0_12 = arith.constant 0 : index
      %c0_13 = arith.constant 0 : index
      %18 = vector.load %arg1[%c0_12, %c0_13] : memref<8x128xf32, #tpu.memory_space<vmem>>, vector<8x128xf32>
      %c0_14 = arith.constant 0 : index
      %c0_15 = arith.constant 0 : index
      %19 = vector.load %arg5[%c0_14, %c0_15] : memref<8x128xf32, #tpu.memory_space<vmem>>, vector<8x128xf32>
      tpu.vector_store %arg5[%c0_14, %c0_15], %18 {strides = array<i32>} : memref<8x128xf32, #tpu.memory_space<vmem>>, vector<8x128xf32>,
    } else {
    }
    %c0 = arith.constant 0 : index
    %c0_1 = arith.constant 0 : index
    %3 = vector.load %arg5[%c0, %c0_1] : memref<8x128xf32, #tpu.memory_space<vmem>>, vector<8x128xf32>
    %c0_2 = arith.constant 0 : index
    %c0_3 = arith.constant 0 : index
    %c0_4 = arith.constant 0 : index
    %4 = vector.load %arg2[%c0_2, %c0_3, %c0_4] : memref<1x128x128xbf16, #tpu.memory_space<vmem>>, vector<1x128x128xbf16>
    %5 = vector.shape_cast %4 : vector<1x128x128xbf16> to vector<128x128xbf16>
    %c0_5 = arith.constant 0 : index
    %c0_6 = arith.constant 0 : index
    %c0_7 = arith.constant 0 : index
    %6 = vector.load %arg3[%c0_5, %c0_6, %c0_7] : memref<1x1x128xf32, #tpu.memory_space<vmem>>, vector<1x1x128xf32>
    %7 = vector.shape_cast %6 : vector<1x1x128xf32> to vector<1x128xf32>
    %8 = arith.truncf %3 : vector<8x128xf32> to vector<8x128xbf16>
    %cst = arith.constant dense<0.000000e+00> : vector<8x128xf32>
    %9 = tpu.matmul %8, %5, %cst {dimension_numbers = #tpu.dot_dimension_numbers<[1], [0], [0], [1], [0, 0, 1, 1], [], []>} : vector<8x128xbf16>, vector<128x128xbf16>, vector<8x128xf32> -> vector<8x128xf32>
    %10 = vector.broadcast %7 : vector<1x128xf32> to vector<8x128xf32>
    %11 = arith.addf %9, %10 : vector<8x128xf32>
    %cst_8 = arith.constant 0.000000e+00 : f32
    %12 = vector.broadcast %cst_8 : f32 to vector<8x128xf32>
    %13 = arith.maximumf %11, %12 : vector<8x128xf32>
    %c0_9 = arith.constant 0 : index
    %c0_10 = arith.constant 0 : index
    %14 = vector.load %arg5[%c0_9, %c0_10] : memref<8x128xf32, #tpu.memory_space<vmem>>, vector<8x128xf32>
    tpu.vector_store %arg5[%c0_9, %c0_10], %13 {strides = array<i32>} : memref<8x128xf32, #tpu.memory_space<vmem>>, vector<8x128xf32>,
    %c2_i32 = arith.constant 2 : i32
    %15 = arith.cmpi eq, %arg0, %c2_i32 : i32
    %16 = arith.extui %15 : i1 to i32
    %c0_i32_11 = arith.constant 0 : i32
    %17 = arith.cmpi ne, %16, %c0_i32_11 : i32
    scf.if %17 {
      %c0_12 = arith.constant 0 : index
      %c0_13 = arith.constant 0 : index
      %18 = vector.load %arg4[%c0_12, %c0_13] : memref<8x128xf32, #tpu.memory_space<vmem>>, vector<8x128xf32>
      tpu.vector_store %arg4[%c0_12, %c0_13], %13 {strides = array<i32>} : memref<8x128xf32, #tpu.memory_space<vmem>>, vector<8x128xf32>,
    } else {
    }
    return
  }
  func.func @transform_0(%arg0: i32) -> (i32, i32) {
    %c0_i32 = arith.constant 0 : i32
    %c0_i32_0 = arith.constant 0 : i32
    %c0_i32_1 = arith.constant 0 : i32
    return %c0_i32, %c0_i32_0 : i32, i32
  }
  func.func @transform_1(%arg0: i32) -> (i32, i32, i32) {
    %c0_i32 = arith.constant 0 : i32
    %c0_i32_0 = arith.constant 0 : i32
    %c0_i32_1 = arith.constant 0 : i32
    return %arg0, %c0_i32, %c0_i32_0 : i32, i32, i32
  }
  func.func @transform_2(%arg0: i32) -> (i32, i32, i32) {
    %c0_i32 = arith.constant 0 : i32
    %c0_i32_0 = arith.constant 0 : i32
    %c0_i32_1 = arith.constant 0 : i32
    return %arg0, %c0_i32, %c0_i32_0 : i32, i32, i32
  }
  func.func @transform_3(%arg0: i32) -> (i32, i32) {
    %c0_i32 = arith.constant 0 : i32
    %c0_i32_0 = arith.constant 0 : i32
    %c0_i32_1 = arith.constant 0 : i32
    return %c0_i32, %c0_i32_0 : i32, i32
  }
}

</mosaic_0001>

<bundles_post_ra>
// kernel: tpu_custom_call.1
= control target key start
LH: loop header
LB: loop body
LE: loop exit
PB: predicated region body
PF: predicated region fallthrough
CT: control target
= control target key end

     0   :  { %8 = vsyncpa [#allocation4], 0  ;;  %s881_s0 = inlined_call_operand.hbm [shape: f32[8,128], index: 0, kind: input, shape index: {}]   ;;  %s882_s1 = inlined_call_operand.hbm [shape: bf16[3,128,128], index: 1, kind: input, shape index: {}]   ;;  %s883_s2 = inlined_call_operand.vmem [shape: f32[3,1,128], index: 2, kind: input, shape index: {}]   ;;  %s884_s3 = inlined_call_operand.hbm [shape: f32[8,128], index: 3, kind: output, shape index: {}]  }
   0x1   :  { %9 = vsyncpa [#allocation7], 0 }
   0x2   :  { %11 = vsyncpa [#allocation7 + $0x1], 0 }
   0x3   :  { %12 = vsyncpa [#allocation5], 0  ;;  %s688_s12 = smov 0   ;;  %s690_s13 = smov 0  }
   0x4   :  { %s692_s14 = smov 0   ;;  %s694_s15 = smov 0  }
   0x5 LB: > { %s707_s16 = sadd.s32 4294967295, %s659_s15   ;;  %s710_s17 = sadd.s32 1, %s659_s15   ;;  %s659_s15 = sphi %s694_s15, %s903_s15   ;;  %s655_s14 = sphi %s692_s14, %s902_s14   ;;  %s651_s13 = sphi %s690_s13, %s901_s13   ;;  %s647_s12 = sphi %s688_s12, %s900_s12  }
   0x6   : > { %s43_s18 = ssub.s32 %s659_s15, %s710_s17  ;;  %s46_s19 = sadd.s32 1, %s655_s14 }
   0x7   : > { %p44_p0 = scmp.eq.s32.totalorder %s43_s18, 0  ;;  %p53_p1 = scmp.ne.s32.totalorder %s655_s14, %s651_s13 }
   0x8   : > { %p54_p2 = scmp.eq.s32.totalorder %s659_s15, 0  ;;  %p59_p3 = scmp.ne.s32.totalorder %s651_s13, %s647_s12 }
   0x9   : > { %s720_s20 = scalar_select %p44_p0, %s655_s14, %s46_s19  }
   0xa   : > { %p722_p4 = por %p54_p2, %p53_p1  ;;  %p885_p5 = scmp.eq.s32.totalorder %s707_s16, 0 }
   0xb   : > { %p410_p6 = scmp.ge.s32.totalorder %s659_s15, 1  ;;  %p117_p7 = scmp.lt.s32.totalorder %s659_s15, 4 }
   0xc   : > { %p731_p8 = por %p885_p5, %p59_p3  ;;  %s661_s24 = smov [#allocation3]  }
   0xd   : > { %p736_p10 = pnand %p410_p6, %p117_p7  ;;  %s130_s25 = sshll.u32 %s661_s24, 4  ;;  %s131_s25 = int_to_ptr.vmem [resolvable:$true] %s130_s25 }
   0xe   : > { %s890_s22 = scalar_select %p731_p8, 1, 0 }
   0xf   : > { %s891_s23 = scalar_select %p736_p10, 1, 0 }
  0x10   : > { %p474_p11 = pneg %p736_p10  ;;  %p483_p12 = scmp.lt.s32.totalorder %s659_s15, 3 }
  0x11   : > { %s141_s26 = sand.u32 1, %s655_s14   ;;  %s533_s5 = scalar_lea.hbm %s881_s0, 128 }
  0x12   : > { %p746_p13 = pnand %p474_p11, %p885_p5  ;;  %p752_p0 = pnand %p483_p12, %p722_p4 }
  0x13   : > { %s413_s29 = sshll.u32 %s141_s26, 6  ;;  %p534_p1 = scmp.ne.s32.totalorder %s881_s0, %s533_s5 }
  0x14   : > { %s893_s28 = scalar_select %p752_p0, 1, 0 }
  0x15   : > { %p535_p2 = pneg %p746_p13  ;;  %p540_p4 = scmp.lt.u32.totalorder %s533_s5, %s881_s0 }
  0x17   : > { %p536_p3 = pnand %p535_p2, %p534_p1 }
  0x19   : > { %p537_p6 = pneg %p536_p3 }
  0x1b   : > { %p542_p7 = pnand %p540_p4, %p537_p6 }
  0x1d   : > { %545 = shalt.err (!%p542_p7)
}
  0x1e   : > { %s546_s10 = scalar_lea.vmem %s131_s25, 128  ;;  %p554_p5 = scmp.lt.s32.totalorder %s131_s25, %s131_s25 }
  0x1f   : > { %p547_p11 = scmp.ne.s32.totalorder %s131_s25, %s546_s10  ;;  %p555_p8 = scmp.lt.s32.totalorder %s546_s10, %s546_s10 }
  0x21   : > { %p549_p12 = pnand %p547_p11, %p535_p2  ;;  %p556_p10 = por %p555_p8, %p554_p5 }
  0x23   : > { %p550_p9 = pneg %p549_p12 }
  0x25   : > { %p557_p0 = pnand %p556_p10, %p550_p9 }
  0x27   : > { %560 = shalt.err (!%p557_p0)
}
  0x28   : > { %477 = dma.hbm_to_vmem [thread:$0]  (!%p746_p13), %s881_s0, 128, %s131_s25, [#allocation4]  }
  0x29   : > { %s434_s18 = sshll.u32 %s659_s15, 10  ;;  %s145_s30 = scalar_lea.vmem [#allocation6], %s413_s29 }
  0x2a   : > { %s776_s24 = scalar_lea.hbm %s882_s1, %s434_s18  ;;  %s152_s4 = sshll.u32 %s145_s30, 4  ;;  %s778_s4 = int_to_ptr.vmem [resolvable:$true] %s152_s4 }
  0x2b   : > { %s780_s27 = scalar_lea.sflag [#allocation7], %s141_s26  ;;  %s561_s5 = scalar_lea.hbm %s776_s24, 1024 }
  0x2c   : > { %p562_p5 = scmp.ne.s32.totalorder %s776_s24, %s561_s5  ;;  %p894_p8 = scmp.ne.s32.totalorder %s893_s28, 0 }
  0x2d   : > { %s566_s6 = scalar_lea.hbm %s882_s1, 3072  ;;  %p567_p0 = scmp.lt.u32.totalorder %s776_s24, %s882_s1 }
  0x2e   : > { %p563_p9 = pneg %p894_p8  ;;  %p568_p1 = scmp.lt.u32.totalorder %s566_s6, %s561_s5 }
  0x2f   : > { %p570_p3 = scmp.lt.u32.totalorder %s561_s5, %s776_s24 }
  0x30   : > { %p564_p10 = pnand %p563_p9, %p562_p5  ;;  %p569_p2 = por %p568_p1, %p567_p0 }
  0x32   : > { %p565_p13 = pneg %p564_p10  ;;  %p571_p6 = por %p570_p3, %p569_p2 }
  0x34   : > { %p572_p4 = pnand %p571_p6, %p565_p13 }
  0x36   : > { %575 = shalt.err (!%p572_p4)
}
  0x37   : > { %s576_s26 = scalar_lea.vmem %s778_s4, 1024  ;;  %s662_s29 = smov [#allocation6]  }
  0x38   : > { %p577_p7 = scmp.ne.s32.totalorder %s778_s4, %s576_s26  ;;  %s581_s9 = sshll.u32 %s662_s29, 4  ;;  %s582_s9 = int_to_ptr.vmem [resolvable:$false] %s581_s9 }
  0x39   : > { %s583_s10 = scalar_lea.vmem %s582_s9, 2048  ;;  %p584_p5 = scmp.lt.s32.totalorder %s778_s4, %s582_s9 }
  0x3a   : > { %p579_p11 = pnand %p577_p7, %p563_p9  ;;  %p585_p10 = scmp.lt.s32.totalorder %s583_s10, %s576_s26 }
  0x3c   : > { %p580_p12 = pneg %p579_p11  ;;  %p586_p0 = por %p585_p10, %p584_p5 }
  0x3e   : > { %p587_p1 = pnand %p586_p0, %p580_p12 }
  0x40   : > { %590 = shalt.err (!%p587_p1)
}
  0x41   : > { %s663_s11 = smov 64   ;;  %s664_s12 = smov 4  }
  0x42   : > { %481 = dma.hbm_to_vmem [thread:$0]  (!%p894_p8), %s776_s24, 1024, %s778_s4, %s780_s27, %s663_s11, %s663_s11, %s664_s12  }
  0x43   : > { %p895_p9 = scmp.ne.s32.totalorder %s891_s23, 0 }
  0x44   : > { %p896_p13 = scmp.eq.s32.totalorder (!%p895_p9), %s707_s16, 0 }
  0x45   : > { %170 = sbr.rel (%p895_p9) target bundleno = 366 (0x16e), region = 32 }
  0x4c   : > { %634 = dma.done.wait (%p896_p13), [#allocation4], 128   ;;  %p897_p2 = pmov %p896_p13 }
  0x4d   : > { %s176_s18 = sand.u32 1, %s651_s13   ;;  %p898_p3 = scmp.ne.s32.totalorder %s890_s22, 0 }
  0x4e   : > { %636 = vsyncadd (%p897_p2), [#allocation4], 4294967168  ;;  %s418_s19 = sshll.u32 %s176_s18, 6  ;;  %s177_s21 = scalar_lea.sflag [#allocation7], %s176_s18 }
  0x4f   : > { %s815_s30 = scalar_lea.vmem [#allocation6], %s418_s19 }
  0x50   : > { %638 = dma.done.wait (%p898_p3), %s177_s21, 1024  }
  0x51   : > { %640 = vsyncadd (%p898_p3), %s177_s21, 4294966272  ;;  %p201_p8 = scmp.lt.s32.totalorder %s707_s16, 2  ;;  %p899_p6 = scmp.ne.s32.totalorder %s707_s16, 0 }
  0x52   : > { %v209_v0 = vld [vmem:[#allocation3] sm:$0xff] (!%p899_p6) }
  0x53   : > { %s823_s23 = scalar_select %p201_p8, %s707_s16, 2 }
  0x54   : > { %208 = sbr.rel (%p899_p6) target bundleno = 91 (0x5b), region = 44  ;;  %210 = vst [vmem:[#allocation2] sm:$0xff] (!%p899_p6), %v209_v0 }
  0x55   : > { %s203_s4 = scalar_lea.vmem %s883_s2, %s823_s23 }
  0x5b PF: > { %v525_v1 = vld [vmem:[%s815_s30] sm:$0xff]   ;;  %v665_v2 = vmov 0.0   ;;  %v526_v3 = vld [vmem:[%s815_s30 + $0x8] sm:$0xff]   ;;  %vm666_vm0 = vmmov 0   ;;  %v527_v4 = vld [vmem:[%s815_s30 + $0x10] sm:$0xff]   ;;  %p429_p4 = scmp.ne.s32.totalorder %s707_s16, 2 }
  0x5c   : > { %444 = vmatprep.subr.bf16.mxu0 %v665_v2  ;;  %460 = vmatprep.mubr.msk.bf16.mxu0 %vm666_vm0, %v665_v2  ;;  %v528_v5 = vld [vmem:[%s815_s30 + $0x18] sm:$0xff]   ;;  %v529_v6 = vld [vmem:[%s815_s30 + $0x20] sm:$0xff]   ;;  %v530_v7 = vld [vmem:[%s815_s30 + $0x28] sm:$0xff]  }
  0x5d   : > { %445 = vmatpush3.bf16.msra.mxu0 %v525_v1  ;;  %v531_v8 = vld [vmem:[%s815_s30 + $0x30] sm:$0xff]   ;;  %v532_v9 = vld [vmem:[%s815_s30 + $0x38] sm:$0xff]  }
  0x5e   : > { %446 = vmatprep.subr.bf16.mxu0 %v665_v2  ;;  %v211_v10 = vld [vmem:[#allocation2] sm:$0xff] }
  0x5f   : > { %v229_v11 = vpack.c.bf16 %v211_v10, %v211_v10  ;;  %v420_v12 = vld [vmem:[%s203_s4] ss:$0 sm:$0xff] }
  0x61   : > { %447 = vmatpush3.bf16.msra.mxu0 %v526_v3 }
  0x62   : > { %448 = vmatprep.subr.bf16.mxu0 %v665_v2 }
  0x65   : > { %449 = vmatpush3.bf16.msra.mxu0 %v527_v4 }
  0x66   : > { %450 = vmatprep.subr.bf16.mxu0 %v665_v2 }
  0x69   : > { %451 = vmatpush3.bf16.msra.mxu0 %v528_v5 }
  0x6a   : > { %452 = vmatprep.subr.bf16.mxu0 %v665_v2 }
  0x6d   : > { %453 = vmatpush3.bf16.msra.mxu0 %v529_v6 }
  0x6e   : > { %454 = vmatprep.subr.bf16.mxu0 %v665_v2 }
  0x71   : > { %455 = vmatpush3.bf16.msra.mxu0 %v530_v7 }
  0x72   : > { %456 = vmatprep.subr.bf16.mxu0 %v665_v2 }
  0x75   : > { %457 = vmatpush3.bf16.msra.mxu0 %v531_v8 }
  0x76   : > { %458 = vmatprep.subr.bf16.mxu0 %v665_v2 }
  0x79   : > { %459 = vmatpush3.bf16.msra.mxu0 %v532_v9 }
  0x7c   : > { %461 = vmatmul.mubr.bf16.vlgmr.msra.gmra.mrb[0].mxu0 %v229_v11 }
 0x14e   : > { %329 = sbr.rel (%p429_p4) target bundleno = 341 (0x155), region = 48 }
 0x14f   : > { %v318_v13 = vpop.f32.mrb[0].mxu0 }
 0x150   : > { %v319_v14 = vadd.f32 %v420_v12, %v318_v13  ;;  %v462_v15 = vpop.f32.mrb[1].mxu0 }
 0x151   : > { %v321_v16 = vpop.f32.mrb[2].mxu0 }
 0x152   : > { %v324_v17 = vmax.f32 %v319_v14, 0.0  ;;  %v463_v18 = vpop.f32.mrb[3].mxu0 }
 0x154   : > { %325 = vst [vmem:[#allocation2] sm:$0xff] %v324_v17  ;;  %330 = vst [vmem:[#allocation8] sm:$0xff] (!%p429_p4), %v324_v17 }
 0x155 PF: > { %p485_p7 = scmp.eq.s32.totalorder %s707_s16, 2  ;;  %s667_s5 = smov [#allocation8]  }
 0x156   : > { %s338_s15 = sshll.u32 %s667_s5, 4  ;;  %s339_s15 = int_to_ptr.vmem [resolvable:$true] %s338_s15 }
 0x157   : > { %s591_s25 = scalar_lea.vmem %s339_s15, 128  ;;  %p598_p10 = scmp.lt.s32.totalorder %s339_s15, %s339_s15 }
 0x158   : > { %p592_p11 = scmp.ne.s32.totalorder %s339_s15, %s591_s25  ;;  %p599_p0 = scmp.lt.s32.totalorder %s591_s25, %s591_s25 }
 0x15a   : > { %p593_p12 = pnand %p592_p11, %p485_p7  ;;  %p600_p1 = por %p599_p0, %p598_p10 }
 0x15c   : > { %p594_p5 = pneg %p593_p12 }
 0x15e   : > { %p601_p9 = pnand %p600_p1, %p594_p5 }
 0x160   : > { %604 = shalt.err (!%p601_p9)
}
 0x161   : > { %s605_s8 = scalar_lea.hbm %s884_s3, 128 }
 0x162   : > { %p606_p13 = scmp.ne.s32.totalorder %s884_s3, %s605_s8  ;;  %p611_p8 = scmp.lt.u32.totalorder %s605_s8, %s884_s3 }
 0x164   : > { %p607_p2 = pnand %p606_p13, %p485_p7 }
 0x166   : > { %p608_p3 = pneg %p607_p2 }
 0x168   : > { %p613_p6 = pnand %p611_p8, %p608_p3 }
 0x16a   : > { %616 = shalt.err (!%p613_p6)
}
 0x16b   : > { %471 = dma.vmem_to_hbm [thread:$0]  (%p485_p7), %s339_s15, 128, %s884_s3, [#allocation5]  }
 0x16c   : > { %642 = dma.done.wait (%p485_p7), [#allocation5], 128  }
 0x16d   : > { %644 = vsyncadd (%p485_p7), [#allocation5], 4294967168 }
 0x16e PF: > { %p15_p4 = scmp.ge.s32.totalorder %s710_s17, 5   ;;  %s900_s12 = smov %s651_s13 }
 0x16f   : > { %s901_s13 = smov %s655_s14  ;;  %s902_s14 = smov %s720_s20 }
 0x170   : > { %s903_s15 = smov %s710_s17  ;;  %17 = sbr.rel (!%p15_p4) target bundleno = 5 (0x5), region = 85 }
 0x177   :  { %351 = vsyncpa [#allocation4], 1 }
 0x178   :  { %353 = vsyncpa [#allocation4 + $0x1], 1 }
 0x179   :  { %354 = vsyncpa [#allocation7], 1 }
 0x17a   :  { %356 = vsyncpa [#allocation7 + $0x1], 1 }
 0x17b   :  { %357 = vsyncpa [#allocation5], 1 }
 0x17c   :  { %359 = vsyncpa [#allocation5 + $0x1], 1 }

</bundles_post_ra>
